<compile_context>
chip_gen: v6e
topology: v6e:2x2x1
jax: 0.10.0
libtpu: 0.0.40
codegen_flags: <defaults>
</compile_context>

<pallas_src>
import jax
import jax.numpy as jnp
from jax.experimental import pallas as pl
from jax.experimental.pallas import tpu as pltpu


_LANES = 128
_SUBLANES = 8
# 512 rows x 128 lanes of (cos, sin) pairs per tile:
#   bits block  (2, 512, 128) u32 = 512 KiB, output block (1024, 128) f32 = 512 KiB
# -> ~2 MiB with double-buffering, comfortably inside every generation's VMEM.
_MAX_TILE_HALF_ROWS = 512


def _round_up(x, m):
    return ((x + m - 1) // m) * m


def _boxmuller_kernel(bits_ref, out_ref):
    """bits_ref: (2, R, 128) uint32 raw bits -> out_ref: (2R, 128) f32 ~ N(0,1)."""
    tile_rows = bits_ref.shape[1]                       # static Python int
    u1_bits = bits_ref[0]                               # (R, 128) uint32
    u2_bits = bits_ref[1]

    # Exponent-bit trick: (bits >> 9) | 0x3F800000 bitcast to f32 lies in
    # [1, 2); subtracting 1.0 gives a uniform in [0, 1) with 23 random bits.
    one_bits = jnp.uint32(0x3F800000)
    u1 = jax.lax.bitcast_convert_type((u1_bits >> 9) | one_bits, jnp.float32) - 1.0
    u2 = jax.lax.bitcast_convert_type((u2_bits >> 9) | one_bits, jnp.float32) - 1.0

    # Box-Muller; use (1 - u1) in (0, 1] so log() stays finite.
    r = jnp.sqrt(-2.0 * jnp.log(1.0 - u1))
    theta = (2.0 * jnp.float32(jnp.pi)) * u2

    # Emit BOTH branches -> two normals per uniform pair (lane-dense stores).
    out_ref[:tile_rows, :] = r * jnp.cos(theta)
    out_ref[tile_rows:, :] = r * jnp.sin(theta)


def _randn_pallas(key, batch_size, tab_dim):
    """Standard-normal (batch_size, tab_dim) f32, generated lane-dense in Pallas."""
    total = batch_size * tab_dim
    half = pl.cdiv(total, 2)                            # number of (cos, sin) pairs
    half_rows = _round_up(max(pl.cdiv(half, _LANES), 1), _SUBLANES)
    tile_half_rows = min(half_rows, _MAX_TILE_HALF_ROWS)
    half_rows = _round_up(half_rows, tile_half_rows)
    grid = (half_rows // tile_half_rows,)

    # Fresh raw bits per call (mirrors torch.randn giving new samples each call).
    bits = jax.random.bits(key, (2, half_rows, _LANES), jnp.uint32)

    out_flat = pl.pallas_call(
        _boxmuller_kernel,
        out_shape=jax.ShapeDtypeStruct((2 * half_rows, _LANES), jnp.float32),
        grid=grid,
        in_specs=[pl.BlockSpec((2, tile_half_rows, _LANES), lambda i: (0, i, 0))],
        out_specs=pl.BlockSpec((2 * tile_half_rows, _LANES), lambda i: (i, 0)),
        compiler_params=pltpu.CompilerParams(
            dimension_semantics=("parallel",),          # shards across v7x's 2 TCs
            vmem_limit_bytes=32 * 1024 * 1024,          # safe on v5e/v6e/v7x
        ),
    )(bits)

    # All elements are i.i.d. N(0,1); reshape/slice back to (batch, tab_dim).
    return out_flat.reshape(-1)[:total].reshape(batch_size, tab_dim)


class MockTabAE:
    """JAX/Pallas equivalent of the PyTorch MockTabAE module."""

    def __init__(self, config):
        self.tab_field_list = config.get('tab_field_list', [])
        self.output_tab_dim = config.get('tab_dim', 16)
        # torch.randn has no learnable parameters; keep a key and split per call
        # so successive forward() calls return fresh samples (like torch.randn).
        self._key = jax.random.PRNGKey(0)

    def combine_tab_data(self, batch):
        """Combine per-field (batch,) tensors into a single (batch, F) tensor."""
        if not self.tab_field_list:
            return None
        combined = [jnp.asarray(batch[field], jnp.float32)[:, None]
                    for field in self.tab_field_list]
        return jnp.concatenate(combined, axis=1)

    def forward(self, tab_data):
        if tab_data is None:
            return None
        batch_size = tab_data.shape[0]
        # Exactly like the PyTorch module: output depends only on batch_size;
        # the values inside tab_data are intentionally ignored.
        self._key, sub = jax.random.split(self._key)
        return _randn_pallas(sub, batch_size, self.output_tab_dim)

    __call__ = forward


if __name__ == "__main__":
    key = jax.random.PRNGKey(0)
    batch = 2
    fields = ["f0", "f1", "f2", "f3"]
    cfg = {"tab_field_list": fields, "tab_dim": 16}
    model = MockTabAE(cfg)

    keys = jax.random.split(key, len(fields))
    batch_dict = {f: jax.random.normal(k, (batch,), jnp.float32)
                  for f, k in zip(fields, keys)}

    tab_data = model.combine_tab_data(batch_dict)       # (2, 4)
    assert tab_data.shape == (batch, len(fields))

    out = model.forward(tab_data)                       # (2, 16) ~ N(0, 1)
    out = jax.block_until_ready(out)

    assert out.shape == (batch, cfg["tab_dim"])
    assert out.dtype == jnp.float32
    assert bool(jnp.all(jnp.isfinite(out)))

    # Successive calls give different samples (torch.randn semantics).
    out2 = jax.block_until_ready(model.forward(tab_data))
    assert not bool(jnp.allclose(out, out2))

    # Larger shape exercises the tiled/parallel grid path; check N(0,1) stats.
    big = jax.block_until_ready(_randn_pallas(jax.random.PRNGKey(7), 1024, 256))
    assert big.shape == (1024, 256)
    assert bool(jnp.all(jnp.isfinite(big)))
    assert abs(float(jnp.mean(big))) < 0.05
    assert abs(float(jnp.std(big)) - 1.0) < 0.05

    # None-input path mirrors the PyTorch behavior.
    assert model.forward(None) is None

    print("KERNEL_OK")
</pallas_src>

<mosaic_0001>
module attributes {stable_mosaic.version = 11 : i64} {
  func.func @_boxmuller_kernel(%arg0: i32, %arg1: memref<2x8x128xi32, #tpu.memory_space<vmem>>, %arg2: memref<16x128xf32, #tpu.memory_space<vmem>>) attributes {dimension_semantics = [#tpu.dimension_semantics<parallel>], iteration_bounds = array<i64: 1>, scalar_prefetch = 0 : i64, scratch_operands = 0 : i64, tpu.core_type = #tpu.core_type<tc>, window_params = [{transform_indices = @transform_0, window_bounds = array<i64: 2, 8, 128>}, {transform_indices = @transform_1, window_bounds = array<i64: 16, 128>}]} {
    %c0 = arith.constant 0 : index
    %c0_0 = arith.constant 0 : index
    %c0_1 = arith.constant 0 : index
    %0 = vector.load %arg1[%c0, %c0_0, %c0_1] : memref<2x8x128xi32, #tpu.memory_space<vmem>>, vector<1x8x128xi32>
    %1 = vector.shape_cast %0 : vector<1x8x128xi32> to vector<8x128xi32>
    %c1 = arith.constant 1 : index
    %c0_2 = arith.constant 0 : index
    %c0_3 = arith.constant 0 : index
    %2 = vector.load %arg1[%c1, %c0_2, %c0_3] : memref<2x8x128xi32, #tpu.memory_space<vmem>>, vector<1x8x128xi32>
    %3 = vector.shape_cast %2 : vector<1x8x128xi32> to vector<8x128xi32>
    %c9_i32 = arith.constant 9 : i32
    %4 = vector.broadcast %c9_i32 : i32 to vector<8x128xi32>
    %5 = arith.shrui %1, %4 : vector<8x128xi32>
    %c1065353216_i32 = arith.constant 1065353216 : i32
    %6 = vector.broadcast %c1065353216_i32 : i32 to vector<8x128xi32>
    %7 = arith.ori %5, %6 : vector<8x128xi32>
    %8 = tpu.bitcast %7 : vector<8x128xi32> -> vector<8x128xf32>
    %cst = arith.constant 1.000000e+00 : f32
    %9 = vector.broadcast %cst : f32 to vector<8x128xf32>
    %10 = arith.subf %8, %9 : vector<8x128xf32>
    %c9_i32_4 = arith.constant 9 : i32
    %11 = vector.broadcast %c9_i32_4 : i32 to vector<8x128xi32>
    %12 = arith.shrui %3, %11 : vector<8x128xi32>
    %c1065353216_i32_5 = arith.constant 1065353216 : i32
    %13 = vector.broadcast %c1065353216_i32_5 : i32 to vector<8x128xi32>
    %14 = arith.ori %12, %13 : vector<8x128xi32>
    %15 = tpu.bitcast %14 : vector<8x128xi32> -> vector<8x128xf32>
    %cst_6 = arith.constant 1.000000e+00 : f32
    %16 = vector.broadcast %cst_6 : f32 to vector<8x128xf32>
    %17 = arith.subf %15, %16 : vector<8x128xf32>
    %cst_7 = arith.constant 1.000000e+00 : f32
    %18 = vector.broadcast %cst_7 : f32 to vector<8x128xf32>
    %19 = arith.subf %18, %10 : vector<8x128xf32>
    %20 = math.log %19 : vector<8x128xf32>
    %cst_8 = arith.constant -2.000000e+00 : f32
    %21 = vector.broadcast %cst_8 : f32 to vector<8x128xf32>
    %22 = arith.mulf %21, %20 : vector<8x128xf32>
    %23 = math.sqrt %22 : vector<8x128xf32>
    %cst_9 = arith.constant 2.000000e+00 : f32
    %cst_10 = arith.constant 3.14159274 : f32
    %24 = arith.mulf %cst_9, %cst_10 : f32
    %25 = vector.broadcast %24 : f32 to vector<8x128xf32>
    %26 = arith.mulf %25, %17 : vector<8x128xf32>
    %27 = math.cos %26 : vector<8x128xf32>
    %28 = arith.mulf %23, %27 : vector<8x128xf32>
    %c0_11 = arith.constant 0 : index
    %c0_12 = arith.constant 0 : index
    %29 = vector.load %arg2[%c0_11, %c0_12] : memref<16x128xf32, #tpu.memory_space<vmem>>, vector<8x128xf32>
    tpu.vector_store %arg2[%c0_11, %c0_12], %28 {strides = array<i32>} : memref<16x128xf32, #tpu.memory_space<vmem>>, vector<8x128xf32>,
    %30 = math.sin %26 : vector<8x128xf32>
    %31 = arith.mulf %23, %30 : vector<8x128xf32>
    %c8 = arith.constant 8 : index
    %c0_13 = arith.constant 0 : index
    %32 = vector.load %arg2[%c8, %c0_13] : memref<16x128xf32, #tpu.memory_space<vmem>>, vector<8x128xf32>
    tpu.vector_store %arg2[%c8, %c0_13], %31 {strides = array<i32>} : memref<16x128xf32, #tpu.memory_space<vmem>>, vector<8x128xf32>,
    return
  }
  func.func @transform_0(%arg0: i32) -> (i32, i32, i32) {
    %c0_i32 = arith.constant 0 : i32
    %c0_i32_0 = arith.constant 0 : i32
    %c0_i32_1 = arith.constant 0 : i32
    return %c0_i32, %arg0, %c0_i32_0 : i32, i32, i32
  }
  func.func @transform_1(%arg0: i32) -> (i32, i32) {
    %c0_i32 = arith.constant 0 : i32
    %c0_i32_0 = arith.constant 0 : i32
    return %arg0, %c0_i32 : i32, i32
  }
}

</mosaic_0001>

<bundles_post_ra>
// kernel: tpu_custom_call.1
= control target key start
LH: loop header
LB: loop body
LE: loop exit
PB: predicated region body
PF: predicated region fallthrough
CT: control target
= control target key end

     0   :  { %6 = vsyncpa [#allocation3], 0  ;;  %s403_s0 = inlined_call_operand.hbm [shape: u32[2,8,128], index: 0, kind: input, shape index: {}]   ;;  %s404_s1 = inlined_call_operand.hbm [shape: f32[16,128], index: 1, kind: output, shape index: {}]  }
   0x1   :  { %7 = vsyncpa [#allocation4], 0  ;;  %s350_s6 = smov [#allocation2]  }
   0x2   :  { %s13_s7 = sshll.u32 %s350_s6, 4  ;;  %s14_s7 = int_to_ptr.vmem [resolvable:$true] %s13_s7 }
   0x3   :  { %s314_s8 = scalar_lea.vmem %s14_s7, 256  ;;  %p319_p1 = scmp.lt.s32.totalorder %s14_s7, %s14_s7 }
   0x4   :  { %p315_p0 = scmp.ne.s32.totalorder %s14_s7, %s314_s8  ;;  %p320_p2 = scmp.lt.s32.totalorder %s314_s8, %s314_s8 }
   0x6   :  { %p321_p3 = por %p320_p2, %p319_p1 }
   0x8   :  { %p322_p4 = pnand %p321_p3, %p315_p0 }
   0xa   :  { %325 = shalt.err (!%p322_p4)
}
   0xb   :  { %s351_s9 = smov 128   ;;  %s352_s10 = smov 8  }
   0xc   :  { %19 = dma.hbm_to_vmem [thread:$0]  %s403_s0, 256, %s14_s7, [#allocation3], %s351_s9, %s351_s9, %s352_s10  }
   0xd   :  { %346 = dma.done.wait [#allocation3], 256  }
   0xe   :  { %347 = vsyncadd [#allocation3], 4294967040  ;;  %v25_v0 = vld [vmem:[#allocation2 + $0x8] sm:$0xff]  ;;  %v353_v15 = vmov 683565275   ;;  %v23_v28 = vld [vmem:[#allocation2] sm:$0xff] }
   0xf   :  { %v30_v1 = vshrl.u32 %v25_v0, 9  ;;  %v354_v17 = vmov 2475754826   ;;  %v355_v19 = vmov 2131351028   ;;  %v26_v39 = vshrl.u32 %v23_v28, 9 }
  0x10   :  { %v356_v21 = vmov 2102212464   ;;  %v357_v23 = vmov 920167782   ;;  %v358_v32 = vmov 1326507024  }
  0x11   :  { %v31_v2 = vor.u32 1065353216, %v30_v1  ;;  %v27_v55 = vor.u32 1065353216, %v26_v39  ;;  %s359_s0 = smov [#allocation5]  }
  0x12   :  { %s262_s13 = sshll.u32 %s359_s0, 4  ;;  %s263_s13 = int_to_ptr.vmem [resolvable:$true] %s262_s13 }
  0x13   :  { %v275_v3 = vadd.f32 -1.0, %v31_v2  ;;  %v274_v60 = vadd.f32 -1.0, %v27_v55  ;;  %s326_s14 = scalar_lea.vmem %s263_s13, 256  ;;  %p331_p6 = scmp.lt.s32.totalorder %s263_s13, %s263_s13 }
  0x14   :  { %p327_p5 = scmp.ne.s32.totalorder %s263_s13, %s326_s14  ;;  %p332_p7 = scmp.lt.s32.totalorder %s326_s14, %s326_s14 }
  0x15   :  { %v376_v4 = vmul.f32 6.2831855, %v275_v3  ;;  %v34_v63 = vsub.f32 1.0, %v274_v60 }
  0x16   :  { %p333_p8 = por %p332_p7, %p331_p6 }
  0x17   :  { %v49_v5 = vand.u32 2139095040, %v376_v4  ;;  %v46_v8 = vand.u32 2147483647, %v376_v4  ;;  %298 = vlog2.f32 %v34_v63  ;;  %vm48_vm7 = vcmp.lt.s32.totalorder %v376_v4, 0 }
  0x18   :  { %p334_p9 = pnand %p333_p8, %p327_p5 }
  0x19   :  { %v50_v6 = vshrl.u32 %v49_v5, 23  ;;  %v53_v11 = vand.u32 8388607, %v46_v8  ;;  %vm47_vm8 = vcmp.le.f32.partialorder %v46_v8, 0.7853982 }
  0x1b   :  { %v276_v7 = vadd.s32 4294967169, %v50_v6  ;;  %v54_v25 = vor.u32 8388608, %v53_v11 }
  0x1d   :  { %v56_v9 = vadd.s32 1, %v276_v7  ;;  %v94_v40 = vshll.u32 %v54_v25, 8 }
  0x1f   :  { %vm57_vm0 = vcmp.gt.s32.totalorder %v56_v9, 0 }
  0x20   :  { %v58_v10 = vsel %vm57_vm0, %v56_v9, 0 }
  0x21   :  { %v60_v12 = vand.u32 31, %v58_v10  ;;  %v59_v13 = vshrl.u32 %v58_v10, 5 }
  0x23   :  { %v61_v14 = vsub.s32 32, %v60_v12  ;;  %v63_v16 = vshll.u32 %v353_v15, %v60_v12  ;;  %v66_v18 = vshll.u32 %v354_v17, %v60_v12  ;;  %v69_v20 = vshll.u32 %v355_v19, %v60_v12 }
  0x24   :  { %v72_v22 = vshll.u32 %v356_v21, %v60_v12  ;;  %v75_v24 = vshll.u32 %v357_v23, %v60_v12  ;;  %vm78_vm1 = vcmp.lt.s32.totalorder %v59_v13, 1  ;;  %vm81_vm2 = vcmp.lt.s32.totalorder %v59_v13, 4  ;;  %v299_v11 = vpop.eup %298 }
  0x25   :  { %v64_v26 = vshrl.u32 %v354_v17, %v61_v14  ;;  %v67_v27 = vshrl.u32 %v355_v19, %v61_v14  ;;  %v62_v29 = vshrl.u32 %v353_v15, %v61_v14  ;;  %v70_v30 = vshrl.u32 %v356_v21, %v61_v14 }
  0x26   :  { %v73_v31 = vshrl.u32 %v357_v23, %v61_v14  ;;  %v76_v33 = vshrl.u32 %v358_v32, %v61_v14  ;;  %vm80_vm3 = vcmp.lt.s32.totalorder %v59_v13, 3  ;;  %vm79_vm4 = vcmp.lt.s32.totalorder %v59_v13, 2 }
  0x27   :  { %v65_v34 = vor.u32 %v64_v26, %v63_v16  ;;  %v68_v35 = vor.u32 %v67_v27, %v66_v18  ;;  %v71_v36 = vor.u32 %v70_v30, %v69_v20  ;;  %v36_v16 = vmul.f32 0.6931472, %v299_v11 }
  0x28   :  { %v74_v37 = vor.u32 %v73_v31, %v72_v22  ;;  %v77_v38 = vor.u32 %v76_v33, %v75_v24 }
  0x29   :  { %v82_v41 = vsel %vm78_vm1, %v62_v29, %v65_v34  ;;  %v83_v42 = vsel %vm81_vm2, %v71_v36, 2102212464  ;;  %v86_v43 = vsel %vm78_vm1, %v65_v34, %v68_v35  ;;  %v90_v47 = vsel %vm78_vm1, %v68_v35, %v71_v36 }
  0x2a   :  { %v87_v44 = vsel %vm81_vm2, %v74_v37, 920167782  ;;  %v84_v45 = vsel %vm80_vm3, %v68_v35, %v83_v42  ;;  %v91_v48 = vsel %vm81_vm2, %v77_v38, 1326507024  ;;  %v37_v21 = vmul.f32 -2.0, %v36_v16 }
  0x2b   :  { %v88_v46 = vsel %vm80_vm3, %v71_v36, %v87_v44  ;;  %v92_v50 = vsel %vm80_vm3, %v74_v37, %v91_v48  ;;  %v85_v51 = vsel %vm79_vm4, %v82_v41, %v84_v45  ;;  %vm138_vm1 = vweird.f32 %v376_v4 }
  0x2c   :  { %v89_v49 = vsel %vm79_vm4, %v86_v43, %v88_v46  ;;  %v93_v52 = vsel %vm79_vm4, %v90_v47, %v92_v50  ;;  %v101_v58 = vmul.u32 %v94_v40, %v85_v51  ;;  %300 = vrsqrt.f32 %v37_v21 }
  0x2d   :  { %v382_v53 = vmul.u32.u64.low %v94_v40, %v89_v49  ;;  %v383_v54 = vmul.u32.u64.high %v94_v40, %v89_v49, %v382_v53  ;;  %v385_v56 = vmul.u32.u64.low %v94_v40, %v93_v52  ;;  %v386_v57 = vmul.u32.u64.high %v94_v40, %v93_v52, %v385_v56 }
  0x2e   :  { %vm40_vm9 = vcmp.eq.f32.partialorder %v37_v21, inf  ;;  %vm42_vm10 = vcmp.eq.f32.partialorder %v37_v21, 0.0  ;;  %v43_v38 = vand.u32 2147483648, %v37_v21 }
  0x2f   :  { %v104_v59 = vadd.s32 1, %v383_v54  ;;  %vm103_vm5 = vc.u32 %v386_v57, %v382_v53  ;;  %v102_v10 = vadd.s32 %v382_v53, %v386_v57 }
  0x31   :  { %v105_v61 = vsel %vm103_vm5, %v104_v59, %v383_v54 }
  0x32   :  { %v106_v62 = vadd.s32 %v105_v61, %v101_v58 }
  0x34   :  { %v107_v0 = vadd.s32 536870912, %v106_v62 }
  0x36   :  { %v108_v1 = vshrl.u32 %v107_v0, 30 }
  0x38   :  { %v109_v2 = vshll.u32 %v108_v1, 30  ;;  %v132_v26 = vsub.s32 4, %v108_v1 }
  0x39   :  { %v301_v33 = vpop.eup %300 }
  0x3a   :  { %v110_v3 = vsub.s32 %v106_v62, %v109_v2  ;;  %v133_v29 = vsel %vm48_vm7, %v132_v26, %v108_v1  ;;  %v39_v36 = vmul.f32 %v301_v33, %v37_v21 }
  0x3b   :  { %v135_v31 = vsel %vm47_vm8, 0, %v133_v29 }
  0x3c   :  { %v112_v5 = vsub.s32 0, %v110_v3  ;;  %v244_v32 = vadd.s32 3, %v135_v31  ;;  %v139_v34 = vand.u32 3, %v135_v31  ;;  %v41_v39 = vsel %vm40_vm9, %v37_v21, %v39_v36 }
  0x3d   :  { %v44_v44 = vsel %vm42_vm10, %v43_v38, %v41_v39 }
  0x3e   :  { %v277_v6 = vmin.u32 %v112_v5, %v110_v3  ;;  %v245_v35 = vand.u32 3, %v244_v32  ;;  %vm144_vm11 = vcmp.eq.s32.totalorder %v139_v34, 2  ;;  %vm141_vm13 = vcmp.eq.s32.totalorder %v139_v34, 0 }
  0x3f   :  { %vm140_vm15 = vcmp.lt.s32.totalorder %v139_v34, 2 }
  0x40   :  { %v114_v7 = vclz %v277_v6  ;;  %vm250_vm12 = vcmp.eq.s32.totalorder %v245_v35, 2  ;;  %vm247_vm14 = vcmp.eq.s32.totalorder %v245_v35, 0  ;;  %vm246_vm0 = vcmp.lt.s32.totalorder %v245_v35, 2 }
  0x42   :  { %v278_v9 = vadd.s32 4294967294, %v114_v7 }
  0x44   :  { %vm279_vm6 = vcmp.lt.s32.totalorder %v278_v9, 0 }
  0x45   :  { %v117_v12 = vsel %vm279_vm6, 0, %v278_v9 }
  0x46   :  { %v118_v13 = vsub.s32 32, %v117_v12  ;;  %v119_v14 = vshll.u32 %v110_v3, %v117_v12  ;;  %v122_v15 = vsub.s32 4294967266, %v117_v12 }
  0x48   :  { %v120_v17 = vshrl.u32 %v102_v10, %v118_v13  ;;  %v123_v18 = vadd.s32 127, %v122_v15 }
  0x4a   :  { %v121_v19 = vor.u32 %v120_v17, %v119_v14  ;;  %v124_v20 = vshll.u32 %v123_v18, 23 }
  0x4c   :  { %v125_v22 = vor.u32 4788187, %v124_v20  ;;  %v128_v23 = vcvt.s32.f32 %v121_v19 }
  0x4e   :  { %v126_v24 = vand.u32 2147483647, %v125_v22 }
  0x50   :  { %v129_v25 = vmul.f32 %v128_v23, %v126_v24 }
  0x52   :  { %v130_v27 = vxor.u32 2147483648, %v129_v25 }
  0x54   :  { %v131_v28 = vsel %vm48_vm7, %v130_v27, %v129_v25 }
  0x55   :  { %v134_v30 = vsel %vm47_vm8, %v376_v4, %v131_v28 }
  0x56   :  { %302 = vcosq.f32 %v134_v30 }
  0x57   :  { %304 = vsinq.f32 %v134_v30 }
  0x63   :  { %v303_v37 = vpop.eup %302 }
  0x64   :  { %v305_v8 = vpop.eup %304  ;;  %v145_v40 = vxor.u32 2147483648, %v303_v37 }
  0x65   :  { %v142_v41 = vxor.u32 2147483648, %v305_v8 }
  0x66   :  { %v146_v42 = vsel %vm144_vm11, %v145_v40, %v305_v8  ;;  %v252_v43 = vsel %vm250_vm12, %v145_v40, %v305_v8 }
  0x67   :  { %v143_v45 = vsel %vm141_vm13, %v303_v37, %v142_v41  ;;  %v249_v46 = vsel %vm247_vm14, %v303_v37, %v142_v41 }
  0x68   :  { %v147_v47 = vsel %vm140_vm15, %v143_v45, %v146_v42  ;;  %v253_v48 = vsel %vm246_vm0, %v249_v46, %v252_v43 }
  0x69   :  { %v148_v49 = vsel %vm138_vm1, nan, %v147_v47  ;;  %v254_v50 = vsel %vm138_vm1, nan, %v253_v48 }
  0x6a   :  { %v149_v51 = vmul.f32 %v148_v49, %v44_v44  ;;  %v255_v52 = vmul.f32 %v254_v50, %v44_v44 }
  0x6c   :  { %150 = vst [vmem:[#allocation5] sm:$0xff] %v149_v51  ;;  %256 = vst [vmem:[#allocation5 + $0x8] sm:$0xff] %v255_v52 }
  0x6d   :  { %337 = shalt.err (!%p334_p9)
}
  0x6e   :  { %268 = dma.vmem_to_hbm [thread:$0]  %s263_s13, 256, %s404_s1, [#allocation4], %s351_s9, %s351_s9, %s352_s10  }
  0x6f   :  { %348 = dma.done.wait [#allocation4], 256  }
  0x70   :  { %349 = vsyncadd [#allocation4], 4294967040 }
  0x71   :  { %272 = vsyncpa [#allocation3], 1 }
  0x72   :  { %273 = vsyncpa [#allocation4], 1 }

</bundles_post_ra>
